<compile_context>
chip_gen: v7x
topology: tpu7x:2x2x1
jax: 0.10.0
libtpu: 0.0.40
codegen_flags: <defaults>
</compile_context>

<pallas_src>
import math

import jax
import jax.numpy as jnp
from jax.experimental import pallas as pl
from jax.experimental.pallas import tpu as pltpu


def _pos_enc_kernel(x_ref, posp_ref, exp_ref, dpm_ref, o_ref):
    # x_ref:    (T, W)   input rows, W = g*D (lane-dense when folding applies)
    # posp_ref: (T, Kp)  bf16 position limbs: cols [0,g) = pos // 256 of the g
    #                    original rows folded into this super-row, cols [g,2g) =
    #                    pos % 256, remaining cols zero padding.
    # exp_ref:  (Kp, W)  bf16 expansion matrix (entries 0/1/256): recombines the
    #                    limbs and replicates each row's position across its D lanes.
    # dpm_ref:  (8, W)   f32 constants: row 0 = div term per lane, row 1 = odd-channel
    #                    mask (1.0 where the original channel index is odd).
    x = x_ref[...].astype(jnp.float32)
    # Exact per-lane position broadcast on the MXU: limbs and matrix entries are
    # bf16-exact integers, products/accumulation are exact in the f32 accumulator.
    pos = jnp.dot(posp_ref[...], exp_ref[...],
                  preferred_element_type=jnp.float32)            # (T, W)
    div = dpm_ref[0:1, :]
    odd = dpm_ref[1:2, :] != 0.0
    ang = pos * div
    # Exact parity select (matches the PyTorch pe buffer up to transcendental
    # rounding; no sin(a + pi/2) shortcut, which drifts ~ulp(a) at large positions).
    pe = jnp.where(odd, jnp.cos(ang), jnp.sin(ang))
    o_ref[...] = (x + pe).astype(o_ref.dtype)


def _tensorcores_per_device():
    # 2 TensorCores behind one device on v4 / v5p (megacore) and v7x.
    try:
        kind = jax.devices()[0].device_kind.lower()
    except Exception:
        return 1
    if any(s in kind for s in ("lite", "v5e", "v6", "v2", "v3")):
        return 1
    if any(s in kind for s in ("v4", "v5", "7")):
        return 2
    return 1


def _vmem_params():
    # (tile budget for the working set, cap for vmem_limit_bytes)
    try:
        kind = jax.devices()[0].device_kind.lower()
    except Exception:
        kind = ""
    if "7" in kind:                     # v7x: 64 MiB physical per TensorCore
        return 20 << 20, 36 << 20
    return 40 << 20, 64 << 20           # v2..v6: 128 MiB physical per core


def _choose_tile_rows(rows_f, width, itemsize, kp, cores, vmem_budget, requested):
    # Double-buffered x-in + out blocks dominate; pos limbs are tiny.
    per_row = 2 * width * (itemsize + itemsize) + 2 * kp * 2
    cap = max(8, vmem_budget // max(1, per_row))
    # ~2 MiB per x block keeps the ~0.35 us/step overhead negligible even for
    # narrow (folded) widths, without blowing the VMEM budget.
    want = requested if requested else max(256, (2 << 20) // max(1, width * itemsize))
    t = min(int(want), int(cap))
    if cores > 1:
        # >= 4 grid steps per TensorCore so each core overlaps DMA with compute
        # and the ragged tail does not unbalance the cores.
        per_core = -(-rows_f // (4 * cores))
        t = min(t, max(8, ((per_core + 7) // 8) * 8))
    t = min(t, max(8, ((rows_f + 7) // 8) * 8))
    return max(8, (t // 8) * 8)


def positional_encoding(x, pos, *, dropout_p: float = 0.1, tile_rows: int = 0):
    """x: [S, B, D]; pos: [S, B] (or [S]) integer positions. Returns x + PE(pos)."""
    S, B, D = x.shape
    rows = S * B
    if pos.ndim == 1:
        pos = jnp.broadcast_to(pos[:, None], (S, B))
    pos_flat = pos.reshape(rows).astype(jnp.int32)
    # NOTE: positions must be < 65536 (two bf16 limbs); module default max_len=5000.
    # TODO(synk): add a third limb if positions >= 65536 are ever needed.

    # ---- lane-dense folding: g consecutive rows -> one super-row of width g*D ----
    g = 128 // math.gcd(D, 128)
    if g > 1 and rows % g != 0:
        g = 1          # fallback: unfolded (lane-masked) path for ragged row counts
    W = g * D
    rows_f = rows // g
    xf = x.reshape(rows_f, W)

    # Per-lane constants (resident VMEM block): div term + odd-channel mask.
    ch = jnp.arange(D)
    div = jnp.exp((2 * (ch // 2)).astype(jnp.float32) * (-math.log(10000.0) / D))
    odd = (ch % 2).astype(jnp.float32)
    dpm = (jnp.zeros((8, W), jnp.float32)
           .at[0].set(jnp.tile(div, g))
           .at[1].set(jnp.tile(odd, g)))

    # Position limbs (bf16-exact: values in [0, 255]).
    kp = max(8, ((2 * g + 7) // 8) * 8)          # pad contraction dim to 8
    ph = (pos_flat // 256).reshape(rows_f, g).astype(jnp.float32)
    plo = (pos_flat % 256).reshape(rows_f, g).astype(jnp.float32)
    pos_parts = (jnp.zeros((rows_f, kp), jnp.float32)
                 .at[:, 0:g].set(ph)
                 .at[:, g:2 * g].set(plo)).astype(jnp.bfloat16)

    # Expansion matrix: column j belongs to original-row-offset j // D within the
    # super-row; row k < g carries 256*hi[k], row g <= k < 2g carries lo[k-g].
    grp = jnp.arange(W, dtype=jnp.int32) // D
    k = jnp.arange(2 * g, dtype=jnp.int32)
    sel = (grp[None, :] == (k[:, None] % g)).astype(jnp.float32)
    wgt = jnp.where(k[:, None] < g, 256.0, 1.0)
    expand = (jnp.zeros((kp, W), jnp.float32)
              .at[0:2 * g, :].set(sel * wgt)).astype(jnp.bfloat16)

    # ---- tiling / VMEM sizing (itemsize-, core- and generation-aware) ----
    cores = _tensorcores_per_device()
    budget, limit_cap = _vmem_params()
    itemsize = jnp.dtype(x.dtype).itemsize
    t = _choose_tile_rows(rows_f, W, itemsize, kp, cores, budget, tile_rows)
    grid = (pl.cdiv(rows_f, t),)

    blk = t * W * itemsize
    need = 2 * (2 * blk + t * kp * 2) + (kp * W * 2 + 8 * W * 4)
    vmem_limit = int(min(limit_cap, max(16 << 20, need + (4 << 20))))

    cost = pl.CostEstimate(
        flops=6 * rows * D + 2 * rows_f * kp * W,
        transcendentals=2 * rows * D,
        bytes_accessed=2 * rows * D * itemsize + rows_f * kp * 2
        + kp * W * 2 + 8 * W * 4,
    )

    out = pl.pallas_call(
        _pos_enc_kernel,
        out_shape=jax.ShapeDtypeStruct((rows_f, W), x.dtype),
        grid_spec=pltpu.PrefetchScalarGridSpec(
            num_scalar_prefetch=0,
            grid=grid,
            in_specs=[
                pl.BlockSpec((t, W), lambda i: (i, 0)),
                pl.BlockSpec((t, kp), lambda i: (i, 0)),
                pl.BlockSpec((kp, W), lambda i: (0, 0)),   # constant, stays resident
                pl.BlockSpec((8, W), lambda i: (0, 0)),    # constant, stays resident
            ],
            out_specs=pl.BlockSpec((t, W), lambda i: (i, 0)),
        ),
        compiler_params=pltpu.CompilerParams(
            dimension_semantics=("parallel",),
            vmem_limit_bytes=vmem_limit,
        ),
        cost_estimate=cost,
    )(xf, pos_parts, expand, dpm)

    # Eval-mode dropout == identity.  TODO(synk): training-mode dropout.
    return out.reshape(S, B, D)


def _reference(x, pos, max_len=5000):
    # Pure-JAX reproduction of the PyTorch buffer construction + forward.
    S, B, D = x.shape
    position = jnp.arange(max_len, dtype=jnp.float32)[:, None]
    div_term = jnp.exp(jnp.arange(0, D, 2, dtype=jnp.float32)
                       * (-math.log(10000.0) / D))
    pe = jnp.zeros((max_len, D), jnp.float32)
    pe = pe.at[:, 0::2].set(jnp.sin(position * div_term))
    pe = pe.at[:, 1::2].set(jnp.cos(position * div_term))
    return x + pe[pos]


if __name__ == "__main__":
    key = jax.random.PRNGKey(0)
    kx1, kp1, kx2, kp2 = jax.random.split(key, 4)
    max_len = 5000   # module default; exercises large positions

    # Case 1: d_model = 32 (< 128) -> folded lane-dense path (g = 4, width 128).
    S, B, D = 16, 4, 32
    x1 = jax.random.normal(kx1, (S, B, D), dtype=jnp.float32)
    p1 = jax.random.randint(kp1, (S, B), 0, max_len, dtype=jnp.int32)
    o1 = jax.block_until_ready(positional_encoding(x1, p1))
    r1 = _reference(x1, p1, max_len=max_len)
    assert o1.shape == (S, B, D)
    assert jnp.allclose(o1, r1, atol=1e-5, rtol=1e-5), "folded-path mismatch"

    # Case 2: d_model = 256 (multiple of 128) -> naturally lane-dense path (g = 1).
    S2, B2, D2 = 8, 2, 256
    x2 = jax.random.normal(kx2, (S2, B2, D2), dtype=jnp.float32)
    p2 = jax.random.randint(kp2, (S2, B2), 0, max_len, dtype=jnp.int32)
    o2 = jax.block_until_ready(positional_encoding(x2, p2))
    r2 = _reference(x2, p2, max_len=max_len)
    assert o2.shape == (S2, B2, D2)
    assert jnp.allclose(o2, r2, atol=1e-5, rtol=1e-5), "unfolded-path mismatch"

    print("KERNEL_OK")
</pallas_src>

<mosaic_0001>
module attributes {stable_mosaic.version = 11 : i64} {
  func.func @_pos_enc_kernel(%arg0: i32, %arg1: memref<16x128xf32, #tpu.memory_space<vmem>>, %arg2: memref<16x8xbf16, #tpu.memory_space<vmem>>, %arg3: memref<8x128xbf16, #tpu.memory_space<vmem>>, %arg4: memref<8x128xf32, #tpu.memory_space<vmem>>, %arg5: memref<16x128xf32, #tpu.memory_space<vmem>>) attributes {dimension_semantics = [#tpu.dimension_semantics<parallel>], iteration_bounds = array<i64: 1>, scalar_prefetch = 0 : i64, scratch_operands = 0 : i64, tpu.core_type = #tpu.core_type<tc>, window_params = [{transform_indices = @transform_0, window_bounds = array<i64: 16, 128>}, {transform_indices = @transform_1, window_bounds = array<i64: 16, 8>}, {pipeline_mode = #tpu.pipeline_mode<synchronous>, transform_indices = @transform_2, window_bounds = array<i64: 8, 128>}, {pipeline_mode = #tpu.pipeline_mode<synchronous>, transform_indices = @transform_3, window_bounds = array<i64: 8, 128>}, {transform_indices = @transform_4, window_bounds = array<i64: 16, 128>}]} {
    %c0 = arith.constant 0 : index
    %c0_0 = arith.constant 0 : index
    %0 = vector.load %arg1[%c0, %c0_0] : memref<16x128xf32, #tpu.memory_space<vmem>>, vector<16x128xf32>
    %c0_1 = arith.constant 0 : index
    %c0_2 = arith.constant 0 : index
    %1 = vector.load %arg2[%c0_1, %c0_2] : memref<16x8xbf16, #tpu.memory_space<vmem>>, vector<16x8xbf16>
    %c0_3 = arith.constant 0 : index
    %c0_4 = arith.constant 0 : index
    %2 = vector.load %arg3[%c0_3, %c0_4] : memref<8x128xbf16, #tpu.memory_space<vmem>>, vector<8x128xbf16>
    %cst = arith.constant dense<0.000000e+00> : vector<16x128xf32>
    %3 = tpu.matmul %1, %2, %cst {dimension_numbers = #tpu.dot_dimension_numbers<[1], [0], [0], [1], [0, 0, 1, 1], [], []>} : vector<16x8xbf16>, vector<8x128xbf16>, vector<16x128xf32> -> vector<16x128xf32>
    %c0_5 = arith.constant 0 : index
    %c0_6 = arith.constant 0 : index
    %4 = vector.load %arg4[%c0_5, %c0_6] : memref<8x128xf32, #tpu.memory_space<vmem>>, vector<1x128xf32>
    %c1 = arith.constant 1 : index
    %c0_7 = arith.constant 0 : index
    %5 = vector.load %arg4[%c1, %c0_7] : memref<8x128xf32, #tpu.memory_space<vmem>>, vector<1x128xf32>
    %cst_8 = arith.constant 0.000000e+00 : f32
    %6 = vector.broadcast %cst_8 : f32 to vector<1x128xf32>
    %7 = arith.cmpf one, %5, %6 : vector<1x128xf32>
    %8 = vector.broadcast %4 : vector<1x128xf32> to vector<16x128xf32>
    %9 = arith.mulf %3, %8 : vector<16x128xf32>
    %10 = math.cos %9 : vector<16x128xf32>
    %11 = math.sin %9 : vector<16x128xf32>
    %12 = vector.shape_cast %7 : vector<1x128xi1> to vector<1x128xi1>
    %13 = vector.broadcast %12 : vector<1x128xi1> to vector<16x128xi1>
    %14 = arith.select %13, %10, %11 : vector<16x128xi1>, vector<16x128xf32>
    %15 = arith.addf %0, %14 : vector<16x128xf32>
    %c0_9 = arith.constant 0 : index
    %c0_10 = arith.constant 0 : index
    %16 = vector.load %arg5[%c0_9, %c0_10] : memref<16x128xf32, #tpu.memory_space<vmem>>, vector<16x128xf32>
    tpu.vector_store %arg5[%c0_9, %c0_10], %15 {strides = array<i32>} : memref<16x128xf32, #tpu.memory_space<vmem>>, vector<16x128xf32>,
    return
  }
  func.func @transform_0(%arg0: i32) -> (i32, i32) {
    %c0_i32 = arith.constant 0 : i32
    %c0_i32_0 = arith.constant 0 : i32
    return %arg0, %c0_i32 : i32, i32
  }
  func.func @transform_1(%arg0: i32) -> (i32, i32) {
    %c0_i32 = arith.constant 0 : i32
    %c0_i32_0 = arith.constant 0 : i32
    return %arg0, %c0_i32 : i32, i32
  }
  func.func @transform_2(%arg0: i32) -> (i32, i32) {
    %c0_i32 = arith.constant 0 : i32
    %c0_i32_0 = arith.constant 0 : i32
    %c0_i32_1 = arith.constant 0 : i32
    return %c0_i32, %c0_i32_0 : i32, i32
  }
  func.func @transform_3(%arg0: i32) -> (i32, i32) {
    %c0_i32 = arith.constant 0 : i32
    %c0_i32_0 = arith.constant 0 : i32
    %c0_i32_1 = arith.constant 0 : i32
    return %c0_i32, %c0_i32_0 : i32, i32
  }
  func.func @transform_4(%arg0: i32) -> (i32, i32) {
    %c0_i32 = arith.constant 0 : i32
    %c0_i32_0 = arith.constant 0 : i32
    return %arg0, %c0_i32 : i32, i32
  }
}

</mosaic_0001>

<bundles_post_ra>
// kernel: tpu_custom_call.1
= control target key start
LH: loop header
LB: loop body
LE: loop exit
PB: predicated region body
PF: predicated region fallthrough
CT: control target
= control target key end

     0   :  { %9 = vsyncpa [#allocation3], 0  ;;  %s792_s0 = inlined_call_operand.hbm [shape: f32[16,128], index: 0, kind: input, shape index: {}]   ;;  %s793_s1 = inlined_call_operand.vmem [shape: bf16[16,8], index: 1, kind: input, shape index: {}]   ;;  %s794_s2 = inlined_call_operand.vmem [shape: bf16[8,128], index: 2, kind: input, shape index: {}]   ;;  %s795_s3 = inlined_call_operand.vmem [shape: f32[8,128], index: 3, kind: input, shape index: {}]   ;;  %s796_s4 = inlined_call_operand.hbm [shape: f32[16,128], index: 4, kind: output, shape index: {}]  }
   0x1   :  { %10 = vsyncpa [#allocation4], 0  ;;  %s649_s15 = smov [#allocation2]   ;;  %s601_s19 = scalar_lea.hbm %s792_s0, 256 }
   0x2   :  { %s16_s16 = sshll.u32 %s649_s15, 4  ;;  %p602_p0 = scmp.ne.s32.totalorder %s792_s0, %s601_s19  ;;  %s17_s16 = int_to_ptr.vmem [resolvable:$true] %s16_s16 }
   0x3   :  { %p605_p1 = scmp.lt.u32.totalorder %s601_s19, %s792_s0 }
   0x5   :  { %p607_p2 = pnand %p605_p1, %p602_p0 }
   0x7   :  { %610 = shalt.err (!%p607_p2)
}
   0x8   :  { %s611_s24 = scalar_lea.vmem %s17_s16, 256  ;;  %p616_p4 = scmp.lt.s32.totalorder %s17_s16, %s17_s16 }
   0x9   :  { %p612_p3 = scmp.ne.s32.totalorder %s17_s16, %s611_s24  ;;  %p617_p5 = scmp.lt.s32.totalorder %s611_s24, %s611_s24 }
   0xb   :  { %p618_p6 = por %p617_p5, %p616_p4 }
   0xd   :  { %p619_p7 = pnand %p618_p6, %p612_p3 }
   0xf   :  { %622 = shalt.err (!%p619_p7)
}
  0x10   :  { %s650_s25 = smov 128   ;;  %s651_s26 = smov 8  }
  0x11   :  { %22 = dma.hbm_to_vmem [thread:$0]  %s792_s0, 256, %s17_s16, [#allocation3], %s650_s25, %s650_s25, %s651_s26  }
  0x12   :  { %645 = dma.done.wait [#allocation3], 256  }
  0x13   :  { %646 = vsyncadd [#allocation3], 4294967040  ;;  %v652_v0 = vmov 0.0   ;;  %vm653_vm0 = vmmov 0   ;;  %vm47_vm1 = vcmask 1043456   ;;  %v592_v3 = vld [vmem:[%s793_s1] sm:$0xff]  }
  0x14   :  { %565 = vmatprep.subr.bf16.mxu0 %v652_v0  ;;  %567 = vmatprep.mubr.msk.bf16.mxu0 %vm653_vm0, %v652_v0  ;;  %v37_v1 = vld [vmem:[%s794_s2] sm:$0xf]  ;;  %vm43_vm2 = vcmask 64512   ;;  %v654_v29 = vmov 683565275  }
  0x15   :  { %v49_v2 = vsel %vm47_vm1, %v37_v1, 0  ;;  %v546_v4 = vld [vmem:[%s795_s3] ss:$0 sm:$0xff]  ;;  %v655_v32 = vmov 2475754826  }
  0x16   :  { %566 = vmatpush3.bf16.msra.mxu0 %v49_v2  ;;  %v656_v34 = vmov 2131351028   ;;  %v657_v36 = vmov 2102212464   ;;  %v658_v38 = vmov 920167782  }
  0x17   :  { %v659_v45 = vmov 1326507024  }
  0x19   :  { %568 = vmatmul.mubr.msk.bf16.vlgmr.msra.gmra.mrb[0].mxu0 %vm43_vm2, %v592_v3 }
  0xec   :  { %v85_v5 = vpop.f32.mrb[0].mxu0 }
  0xed   :  { %v711_v6 = vmul.f32 %v546_v4, %v85_v5  ;;  %v569_v7 = vpop.f32.mrb[1].mxu0 }
  0xee   :  { %v88_v8 = vpop.f32.mrb[2].mxu0 }
  0xef   :  { %v101_v9 = vand.u32 2147483647, %v711_v6  ;;  %v104_v10 = vand.u32 2139095040, %v711_v6  ;;  %v715_v11 = vmul.f32 %v546_v4, %v88_v8  ;;  %v570_v12 = vpop.f32.mrb[3].mxu0  ;;  %vm103_vm2 = vcmp.lt.s32.totalorder %v711_v6, 0 }
  0xf1   :  { %v105_v13 = vshrl.u32 %v104_v10, 23  ;;  %v108_v14 = vand.u32 8388607, %v101_v9  ;;  %v207_v15 = vand.u32 2139095040, %v715_v11  ;;  %v204_v17 = vand.u32 2147483647, %v715_v11 }
  0xf2   :  { %vm102_vm1 = vcmp.le.f32.partialorder %v101_v9, 0.7853982 }
  0xf3   :  { %v547_v16 = vadd.s32 4294967169, %v105_v13  ;;  %v208_v18 = vshrl.u32 %v207_v15, 23  ;;  %v109_v20 = vor.u32 8388608, %v108_v14  ;;  %v211_v22 = vand.u32 8388607, %v204_v17 }
  0xf5   :  { %v111_v19 = vadd.s32 1, %v547_v16  ;;  %v551_v21 = vadd.s32 4294967169, %v208_v18  ;;  %v723_v27 = vshll.u32 %v109_v20, 8  ;;  %v212_v31 = vor.u32 8388608, %v211_v22 }
  0xf7   :  { %vm112_vm3 = vcmp.gt.s32.totalorder %v111_v19, 0  ;;  %v214_v24 = vadd.s32 1, %v551_v21  ;;  %v252_v0 = vshll.u32 %v212_v31, 8 }
  0xf8   :  { %v113_v23 = vsel %vm112_vm3, %v111_v19, 0 }
  0xf9   :  { %v114_v25 = vshrl.u32 %v113_v23, 5  ;;  %v115_v26 = vand.u32 31, %v113_v23  ;;  %vm215_vm4 = vcmp.gt.s32.totalorder %v214_v24, 0 }
  0xfa   :  { %v216_v50 = vsel %vm215_vm4, %v214_v24, 0  ;;  %vm205_vm4 = vcmp.le.f32.partialorder %v204_v17, 0.7853982 }
  0xfb   :  { %v116_v28 = vsub.s32 32, %v115_v26  ;;  %v118_v30 = vshll.u32 %v654_v29, %v115_v26  ;;  %v121_v33 = vshll.u32 %v655_v32, %v115_v26  ;;  %v124_v35 = vshll.u32 %v656_v34, %v115_v26 }
  0xfc   :  { %v127_v37 = vshll.u32 %v657_v36, %v115_v26  ;;  %v130_v39 = vshll.u32 %v658_v38, %v115_v26  ;;  %vm133_vm5 = vcmp.lt.s32.totalorder %v114_v25, 1  ;;  %vm135_vm6 = vcmp.lt.s32.totalorder %v114_v25, 3 }
  0xfd   :  { %v119_v40 = vshrl.u32 %v655_v32, %v116_v28  ;;  %v122_v41 = vshrl.u32 %v656_v34, %v116_v28  ;;  %v125_v42 = vshrl.u32 %v657_v36, %v116_v28  ;;  %v117_v43 = vshrl.u32 %v654_v29, %v116_v28 }
  0xfe   :  { %v128_v44 = vshrl.u32 %v658_v38, %v116_v28  ;;  %v131_v46 = vshrl.u32 %v659_v45, %v116_v28  ;;  %vm136_vm7 = vcmp.lt.s32.totalorder %v114_v25, 4  ;;  %v218_v53 = vand.u32 31, %v216_v50 }
  0xff   :  { %v120_v47 = vor.u32 %v119_v40, %v118_v30  ;;  %v123_v48 = vor.u32 %v122_v41, %v121_v33  ;;  %v126_v49 = vor.u32 %v125_v42, %v124_v35  ;;  %vm134_vm8 = vcmp.lt.s32.totalorder %v114_v25, 2 }
 0x100   :  { %v129_v51 = vor.u32 %v128_v44, %v127_v37  ;;  %v132_v52 = vor.u32 %v131_v46, %v130_v39  ;;  %v219_v61 = vsub.s32 32, %v218_v53  ;;  %v217_v4 = vshrl.u32 %v216_v50, 5 }
 0x101   :  { %v137_v54 = vsel %vm133_vm5, %v117_v43, %v120_v47  ;;  %v138_v55 = vsel %vm136_vm7, %v126_v49, 2102212464  ;;  %v141_v56 = vsel %vm133_vm5, %v120_v47, %v123_v48  ;;  %v145_v57 = vsel %vm133_vm5, %v123_v48, %v126_v49 }
 0x102   :  { %v139_v58 = vsel %vm135_vm6, %v123_v48, %v138_v55  ;;  %v142_v59 = vsel %vm136_vm7, %v129_v51, 920167782  ;;  %v146_v60 = vsel %vm136_vm7, %v132_v52, 1326507024  ;;  %v221_v12 = vshll.u32 %v654_v29, %v218_v53 }
 0x103   :  { %v143_v62 = vsel %vm135_vm6, %v126_v49, %v142_v59  ;;  %v147_v63 = vsel %vm135_vm6, %v129_v51, %v146_v60  ;;  %v140_v1 = vsel %vm134_vm8, %v137_v54, %v139_v58  ;;  %v222_v13 = vshrl.u32 %v655_v32, %v219_v61 }
 0x104   :  { %v144_v2 = vsel %vm134_vm8, %v141_v56, %v143_v62  ;;  %v148_v3 = vsel %vm134_vm8, %v145_v57, %v147_v63  ;;  %v224_v14 = vshll.u32 %v655_v32, %v218_v53  ;;  %v225_v15 = vshrl.u32 %v656_v34, %v219_v61 }
 0x105   :  { %v735_v5 = vmul.u32.u64.low %v723_v27, %v148_v3  ;;  %v736_v7 = vmul.u32.u64.high %v723_v27, %v148_v3, %v735_v5  ;;  %v739_v8 = vmul.u32.u64.low %v723_v27, %v144_v2  ;;  %v740_v10 = vmul.u32.u64.high %v723_v27, %v144_v2, %v739_v8 }
 0x106   :  { %v227_v16 = vshll.u32 %v656_v34, %v218_v53  ;;  %v228_v18 = vshrl.u32 %v657_v36, %v219_v61  ;;  %v230_v19 = vshll.u32 %v657_v36, %v218_v53  ;;  %v231_v20 = vshrl.u32 %v658_v38, %v219_v61 }
 0x107   :  { %v223_v21 = vor.u32 %v222_v13, %v221_v12  ;;  %v226_v22 = vor.u32 %v225_v15, %v224_v14  ;;  %v233_v23 = vshll.u32 %v658_v38, %v218_v53  ;;  %v234_v24 = vshrl.u32 %v659_v45, %v219_v61 }
 0x108   :  { %v156_v25 = vmul.u32 %v723_v27, %v140_v1  ;;  %vm158_vm9 = vc.u32 %v736_v7, %v739_v8  ;;  %v159_v26 = vadd.s32 1, %v740_v10  ;;  %v229_v28 = vor.u32 %v228_v18, %v227_v16 }
 0x109   :  { %v220_v30 = vshrl.u32 %v654_v29, %v219_v61  ;;  %v232_v31 = vor.u32 %v231_v20, %v230_v19  ;;  %v235_v32 = vor.u32 %v234_v24, %v233_v23  ;;  %vm236_vm10 = vcmp.lt.s32.totalorder %v217_v4, 1 }
 0x10a   :  { %v160_v33 = vsel %vm158_vm9, %v159_v26, %v740_v10  ;;  %vm238_vm11 = vcmp.lt.s32.totalorder %v217_v4, 3  ;;  %vm239_vm12 = vcmp.lt.s32.totalorder %v217_v4, 4  ;;  %v244_v34 = vsel %vm236_vm10, %v223_v21, %v226_v22 }
 0x10b   :  { %v161_v35 = vadd.s32 %v160_v33, %v156_v25  ;;  %v241_v36 = vsel %vm239_vm12, %v229_v28, 2102212464  ;;  %v245_v37 = vsel %vm239_vm12, %v232_v31, 920167782  ;;  %v248_v27 = vsel %vm236_vm10, %v226_v22, %v229_v28 }
 0x10c   :  { %vm237_vm13 = vcmp.lt.s32.totalorder %v217_v4, 2  ;;  %v240_v38 = vsel %vm236_vm10, %v220_v30, %v223_v21  ;;  %v246_v39 = vsel %vm238_vm11, %v229_v28, %v245_v37  ;;  %v249_v40 = vsel %vm239_vm12, %v235_v32, 1326507024 }
 0x10d   :  { %v162_v41 = vadd.s32 536870912, %v161_v35  ;;  %v242_v42 = vsel %vm238_vm11, %v226_v22, %v241_v36  ;;  %v247_v43 = vsel %vm237_vm13, %v244_v34, %v246_v39  ;;  %v250_v29 = vsel %vm238_vm11, %v232_v31, %v249_v40 }
 0x10e   :  { %v251_v44 = vsel %vm237_vm13, %v248_v27, %v250_v29  ;;  %v750_v45 = vmul.u32.u64.low %v252_v0, %v247_v43  ;;  %v751_v46 = vmul.u32.u64.high %v252_v0, %v247_v43, %v750_v45  ;;  %v243_v50 = vsel %vm237_vm13, %v240_v38, %v242_v42  ;;  %v93_v27 = vld [vmem:[%s795_s3 + $0x1] sm:$0x1]  ;;  %s661_s3 = smov [#allocation5]  }
 0x10f   :  { %v163_v47 = vshrl.u32 %v162_v41, 30  ;;  %v753_v48 = vmul.u32.u64.low %v252_v0, %v251_v44  ;;  %v754_v49 = vmul.u32.u64.high %v252_v0, %v251_v44, %v753_v48  ;;  %v259_v54 = vmul.u32 %v252_v0, %v243_v50  ;;  %s532_s8 = sshll.u32 %s661_s3, 4  ;;  %s533_s8 = int_to_ptr.vmem [resolvable:$true] %s532_s8 }
 0x110   :  { %v262_v52 = vadd.s32 1, %v751_v46  ;;  %v157_v3 = vadd.s32 %v739_v8, %v736_v7  ;;  %v516_v28 = vlaneseq  ;;  %vm94_vm3 = vcmp.ne.f32.partialorder %v93_v27, 0.0  ;;  %s623_s9 = scalar_lea.vmem %s533_s8, 256  ;;  %p628_p9 = scmp.lt.s32.totalorder %s533_s8, %s533_s8 }
 0x111   :  { %v164_v51 = vshll.u32 %v163_v47, 30  ;;  %vm261_vm14 = vc.u32 %v754_v49, %v750_v45  ;;  %v187_v23 = vsub.s32 4, %v163_v47  ;;  %v260_v7 = vadd.s32 %v750_v45, %v754_v49  ;;  %p624_p8 = scmp.ne.s32.totalorder %s533_s8, %s623_s9  ;;  %p629_p10 = scmp.lt.s32.totalorder %s623_s9, %s623_s9 }
 0x112   :  { %v263_v55 = vsel %vm261_vm14, %v262_v52, %v751_v46  ;;  %v517_v39 = vshrl.u32 %v516_v28, 7  ;;  %v660_v46 = vmov 0   ;;  %vm206_vm5 = vcmp.lt.s32.totalorder %v715_v11, 0 }
 0x113   :  { %v165_v53 = vsub.s32 %v161_v35, %v164_v51  ;;  %v264_v57 = vadd.s32 %v263_v55, %v259_v54  ;;  %v188_v35 = vsel %vm103_vm2, %v187_v23, %v163_v47  ;;  %v515_v47 = vsel %vm94_vm3, 1, %v660_v46  ;;  %p630_p11 = por %p629_p10, %p628_p9 }
 0x114   :  { %v190_v41 = vsel %vm102_vm1, 0, %v188_v35  ;;  %v518_v43 = vsub.s32 0, %v517_v39  ;;  %vm193_vm13 = vweird.f32 %v711_v6 }
 0x115   :  { %v167_v56 = vsub.s32 0, %v165_v53  ;;  %v265_v59 = vadd.s32 536870912, %v264_v57  ;;  %v400_v45 = vadd.s32 3, %v190_v41  ;;  %v194_v52 = vand.u32 3, %v190_v41  ;;  %p631_p12 = pnand %p630_p11, %p624_p8 }
 0x116   :  { %v519_v49 = vrot.slane %v515_v47, %v518_v43 }
 0x117   :  { %v548_v58 = vmin.u32 %v167_v56, %v165_v53  ;;  %v266_v61 = vshrl.u32 %v265_v59, 30  ;;  %vm195_vm7 = vcmp.lt.s32.totalorder %v194_v52, 2  ;;  %vm199_vm8 = vcmp.eq.s32.totalorder %v194_v52, 2 }
 0x118   :  { %vm520_vm6 = vcmp.eq.s32.totalorder %v519_v49, 1  ;;  %vm196_vm10 = vcmp.eq.s32.totalorder %v194_v52, 0 }
 0x119   :  { %v169_v60 = vclz %v548_v58  ;;  %v267_v63 = vshll.u32 %v266_v61, 30  ;;  %v290_v44 = vsub.s32 4, %v266_v61 }
 0x11b   :  { %v549_v62 = vadd.s32 4294967294, %v169_v60  ;;  %v268_v1 = vsub.s32 %v264_v57, %v267_v63  ;;  %v291_v51 = vsel %vm206_vm5, %v290_v44, %v266_v61 }
 0x11c   :  { %v293_v57 = vsel %vm205_vm4, 0, %v291_v51 }
 0x11d   :  { %vm550_vm15 = vcmp.lt.s32.totalorder %v549_v62, 0  ;;  %v270_v5 = vsub.s32 0, %v268_v1  ;;  %v504_v63 = vadd.s32 3, %v293_v57 }
 0x11e   :  { %v172_v2 = vsel %vm550_vm15, 0, %v549_v62 }
 0x11f   :  { %v173_v4 = vsub.s32 32, %v172_v2  ;;  %v177_v0 = vsub.s32 4294967266, %v172_v2  ;;  %v174_v10 = vshll.u32 %v165_v53, %v172_v2  ;;  %v552_v14 = vmin.u32 %v270_v5, %v268_v1 }
 0x120   :  { %v401_v53 = vand.u32 3, %v400_v45 }
 0x121   :  { %v175_v12 = vshrl.u32 %v157_v3, %v173_v4  ;;  %v178_v13 = vadd.s32 127, %v177_v0  ;;  %v272_v18 = vclz %v552_v14 }
 0x122   :  { %vm406_vm9 = vcmp.eq.s32.totalorder %v401_v53, 2  ;;  %vm403_vm11 = vcmp.eq.s32.totalorder %v401_v53, 0  ;;  %vm402_vm12 = vcmp.lt.s32.totalorder %v401_v53, 2 }
 0x123   :  { %v176_v15 = vor.u32 %v175_v12, %v174_v10  ;;  %v179_v16 = vshll.u32 %v178_v13, 23  ;;  %v553_v20 = vadd.s32 4294967294, %v272_v18  ;;  %v297_v10 = vand.u32 3, %v293_v57 }
 0x124   :  { %v505_v12 = vand.u32 3, %v504_v63 }
 0x125   :  { %v180_v19 = vor.u32 4788187, %v179_v16  ;;  %v183_v22 = vcvt.s32.f32 %v176_v15  ;;  %vm554_vm0 = vcmp.lt.s32.totalorder %v553_v20, 0  ;;  %vm302_vm14 = vcmp.eq.s32.totalorder %v297_v10, 2 }
 0x126   :  { %v275_v24 = vsel %vm554_vm0, 0, %v553_v20  ;;  %vm510_vm15 = vcmp.eq.s32.totalorder %v505_v12, 2  ;;  %vm299_vm0 = vcmp.eq.s32.totalorder %v297_v10, 0  ;;  %vm506_vm3 = vcmp.lt.s32.totalorder %v505_v12, 2 }
 0x127   :  { %v181_v21 = vand.u32 2147483647, %v180_v19  ;;  %v276_v8 = vsub.s32 32, %v275_v24  ;;  %v280_v26 = vsub.s32 4294967266, %v275_v24  ;;  %v277_v31 = vshll.u32 %v268_v1, %v275_v24  ;;  %v33_v1 = vld [vmem:[#allocation2] sm:$0xff] }
 0x129   :  { %v184_v25 = vmul.f32 %v183_v22, %v181_v21  ;;  %v278_v32 = vshrl.u32 %v260_v7, %v276_v8  ;;  %v281_v33 = vadd.s32 127, %v280_v26  ;;  %v34_v22 = vld [vmem:[#allocation2 + $0x8] sm:$0xff] }
 0x12b   :  { %v185_v30 = vxor.u32 2147483648, %v184_v25  ;;  %v279_v36 = vor.u32 %v278_v32, %v277_v31  ;;  %v282_v37 = vshll.u32 %v281_v33, 23 }
 0x12d   :  { %v186_v34 = vsel %vm103_vm2, %v185_v30, %v184_v25  ;;  %v283_v40 = vor.u32 4788187, %v282_v37  ;;  %v286_v9 = vcvt.s32.f32 %v279_v36  ;;  %vm298_vm2 = vcmp.lt.s32.totalorder %v297_v10, 2 }
 0x12e   :  { %v189_v38 = vsel %vm102_vm1, %v711_v6, %v186_v34  ;;  %vm507_vm1 = vcmp.eq.s32.totalorder %v505_v12, 0 }
 0x12f   :  { %593 = vcosq.f32 %v189_v38  ;;  %v284_v42 = vand.u32 2147483647, %v283_v40 }
 0x130   :  { %595 = vsinq.f32 %v189_v38 }
 0x131   :  { %v287_v29 = vmul.f32 %v286_v9, %v284_v42 }
 0x133   :  { %v288_v48 = vxor.u32 2147483648, %v287_v29 }
 0x135   :  { %v289_v50 = vsel %vm206_vm5, %v288_v48, %v287_v29 }
 0x136   :  { %v292_v54 = vsel %vm205_vm4, %v715_v11, %v289_v50  ;;  %vm296_vm4 = vweird.f32 %v715_v11 }
 0x137   :  { %597 = vcosq.f32 %v292_v54 }
 0x138   :  { %599 = vsinq.f32 %v292_v54 }
 0x139   :  { %v594_v55 = vpop.eup %593 }
 0x13a   :  { %v596_v56 = vpop.eup %595  ;;  %v200_v58 = vxor.u32 2147483648, %v594_v55 }
 0x13b   :  { %v197_v59 = vxor.u32 2147483648, %v596_v56 }
 0x13c   :  { %v201_v17 = vsel %vm199_vm8, %v200_v58, %v596_v56  ;;  %v408_v60 = vsel %vm406_vm9, %v200_v58, %v596_v56 }
 0x13d   :  { %v198_v61 = vsel %vm196_vm10, %v594_v55, %v197_v59  ;;  %v405_v62 = vsel %vm403_vm11, %v594_v55, %v197_v59 }
 0x13e   :  { %v202_v2 = vsel %vm195_vm7, %v198_v61, %v201_v17  ;;  %v409_v3 = vsel %vm402_vm12, %v405_v62, %v408_v60 }
 0x13f   :  { %v203_v4 = vsel %vm193_vm13, nan, %v202_v2  ;;  %v410_v0 = vsel %vm193_vm13, nan, %v409_v3 }
 0x140   :  { %v521_v5 = vsel %vm520_vm6, %v203_v4, %v410_v0 }
 0x141   :  { %v523_v13 = vadd.f32 %v521_v5, %v33_v1  ;;  %v598_v14 = vpop.eup %597 }
 0x142   :  { %v600_v15 = vpop.eup %599  ;;  %v303_v16 = vxor.u32 2147483648, %v598_v14 }
 0x143   :  { %525 = vst [vmem:[#allocation5] sm:$0xff] %v523_v13  ;;  %v300_v18 = vxor.u32 2147483648, %v600_v15 }
 0x144   :  { %v304_v19 = vsel %vm302_vm14, %v303_v16, %v600_v15  ;;  %v512_v6 = vsel %vm510_vm15, %v303_v16, %v600_v15 }
 0x145   :  { %v301_v20 = vsel %vm299_vm0, %v598_v14, %v300_v18  ;;  %v509_v21 = vsel %vm507_vm1, %v598_v14, %v300_v18 }
 0x146   :  { %v305_v23 = vsel %vm298_vm2, %v301_v20, %v304_v19  ;;  %v513_v24 = vsel %vm506_vm3, %v509_v21, %v512_v6 }
 0x147   :  { %v306_v25 = vsel %vm296_vm4, nan, %v305_v23  ;;  %v514_v7 = vsel %vm296_vm4, nan, %v513_v24 }
 0x148   :  { %v522_v8 = vsel %vm520_vm6, %v306_v25, %v514_v7 }
 0x149   :  { %v524_v26 = vadd.f32 %v522_v8, %v34_v22 }
 0x14b   :  { %526 = vst [vmem:[#allocation5 + $0x8] sm:$0xff] %v524_v26 }
 0x14c   :  { %634 = shalt.err (!%p631_p12)
}
 0x14d   :  { %s635_s12 = scalar_lea.hbm %s796_s4, 256 }
 0x14e   :  { %p636_p13 = scmp.ne.s32.totalorder %s796_s4, %s635_s12  ;;  %p639_p0 = scmp.lt.u32.totalorder %s635_s12, %s796_s4 }
 0x150   :  { %p641_p1 = pnand %p639_p0, %p636_p13 }
 0x152   :  { %644 = shalt.err (!%p641_p1)
}
 0x153   :  { %538 = dma.vmem_to_hbm [thread:$0]  %s533_s8, 256, %s796_s4, [#allocation4], %s650_s25, %s650_s25, %s651_s26  }
 0x154   :  { %647 = dma.done.wait [#allocation4], 256  }
 0x155   :  { %648 = vsyncadd [#allocation4], 4294967040 }
 0x156   :  { %542 = vsyncpa [#allocation3], 1 }
 0x157   :  { %543 = vsyncpa [#allocation4], 1 }

</bundles_post_ra>
